<compile_context>
chip_gen: v7x
topology: tpu7x:2x2x1
jax: 0.10.0
libtpu: 0.0.40
codegen_flags: <defaults>
</compile_context>

<pallas_src>
import functools
import math

import jax
import jax.numpy as jnp
from jax.experimental import pallas as pl
from jax.experimental.pallas import tpu as pltpu


def _round_up(x, m):
    return ((x + m - 1) // m) * m


# --------------------------------------------------------------------------- #
# One-time parameter preparation (hoisted out of the per-call path)
# --------------------------------------------------------------------------- #
def pack_weights(params, input_t):
    """Fold BN affine into the fc weights and pack every weight/bias into a
    single lane-dense (rows, LW) f32 blob => one HBM->VMEM DMA per call."""
    T_fc, nodes, I = params["fc_w"].shape
    K = params["i2o_w"].shape[0]
    assert 1 <= input_t <= T_fc

    TI = input_t * I
    TN = input_t * nodes
    TK = input_t * K
    OUT_W = _round_up(max(TK, 128), 128)        # lane-dense kernel output width
    LW = _round_up(max(TN, OUT_W, 128), 128)    # blob lane width

    eye = jnp.eye(input_t, dtype=jnp.float32)

    # Block-diagonal fc weights (in->out layout) with BN gamma/beta folded in:
    #   h_t = relu( z_t @ Wfc_t + bfc_t ),   z = (x - mean) * rsqrt(var + eps)
    #   Wfc[t*I+i, t*nodes+n] = gamma[t,i] * fc_w[t,n,i]
    #   bfc[t*nodes+n]        = sum_i beta[t,i] * fc_w[t,n,i] + fc_b[t,n]
    fcw_t = jnp.transpose(params["fc_w"][:input_t], (0, 2, 1))            # (t, I, nodes)
    fcw_g = fcw_t * params["bn_gamma"][:input_t][:, :, None]
    fcw_bd = jnp.einsum("tin,ts->tisn", fcw_g, eye).reshape(TI, TN)
    fcb = (jnp.einsum("ti,tin->tn", params["bn_beta"][:input_t], fcw_t)
           + params["fc_b"][:input_t]).reshape(1, TN)

    # Block-diagonal i2o weights (the same Linear shared across timesteps).
    i2ow_t = params["i2o_w"].T                                            # (nodes, K)
    i2o_bd = jnp.einsum("nk,ts->tnsk", i2ow_t, eye).reshape(TN, TK)
    i2ob = jnp.tile(params["i2o_b"].reshape(1, K), (1, input_t))          # (1, TK)

    l2ow_t = params["l2o_w"].T                                            # (K, K)
    l2ob = params["l2o_b"].reshape(1, K)

    def pad_lanes(m):
        return jnp.pad(m, ((0, 0), (0, LW - m.shape[1])))

    # Row layout inside the blob (all offsets 8-aligned for clean carving).
    r_fcw = 0
    r_i2o = _round_up(r_fcw + TI, 8)
    r_l2o = _round_up(r_i2o + TN, 8)
    r_fcb = _round_up(r_l2o + K, 8)
    r_i2ob = r_fcb + 8
    r_l2ob = r_i2ob + 8
    rows = _round_up(r_l2ob + 8, 8)

    blob = jnp.zeros((rows, LW), jnp.float32)
    blob = blob.at[r_fcw:r_fcw + TI].set(pad_lanes(fcw_bd))
    blob = blob.at[r_i2o:r_i2o + TN].set(pad_lanes(i2o_bd))
    blob = blob.at[r_l2o:r_l2o + K].set(pad_lanes(l2ow_t))
    blob = blob.at[r_fcb:r_fcb + 1].set(pad_lanes(fcb))
    blob = blob.at[r_i2ob:r_i2ob + 1].set(pad_lanes(i2ob))
    blob = blob.at[r_l2ob:r_l2ob + 1].set(pad_lanes(l2ob))

    meta = dict(I=I, K=K, nodes=nodes, TI=TI, TN=TN, TK=TK,
                OUT_W=OUT_W, LW=LW,
                r_fcw=r_fcw, r_i2o=r_i2o, r_l2o=r_l2o,
                r_fcb=r_fcb, r_i2ob=r_i2ob, r_l2ob=r_l2ob)
    return blob, meta


# --------------------------------------------------------------------------- #
# Kernel
# --------------------------------------------------------------------------- #
def _forward_kernel(a, input_t, m, x_ref, w_ref, out_ref):
    """x_ref: (B, input_t*I) lane-dense activations.
       w_ref: packed weight blob (see pack_weights).
       out_ref: (B, OUT_W); cols [0, input_t*K) hold output_list, rest zero."""
    K, TI, TN, TK = m["K"], m["TI"], m["TN"], m["TK"]
    OUT_W, LW = m["OUT_W"], m["LW"]

    x = x_ref[...]                                            # (B, TI)
    B = x.shape[0]

    # BatchNorm1d (training-mode batch stats) for every timestep at once:
    # one cross-sublane reduce over the batch axis on a lane-dense slab.
    mean = jnp.mean(x, axis=0, keepdims=True)                 # (1, TI)
    var = jnp.mean((x - mean) ** 2, axis=0, keepdims=True)    # biased variance
    z = (x - mean) * jax.lax.rsqrt(var + 1e-5)                # gamma/beta folded into Wfc/bfc

    # All per-timestep fc_ins Linears as ONE matmul (block-diagonal weights).
    wfc = w_ref[m["r_fcw"]:m["r_fcw"] + TI, :]                # (TI, LW), cols >= TN are zero
    bfc = w_ref[m["r_fcb"]:m["r_fcb"] + 1, :]                 # (1, LW)
    h = jnp.maximum(
        jnp.dot(z, wfc, preferred_element_type=jnp.float32) + bfc, 0.0)   # (B, LW)

    # i2o for every timestep as ONE matmul (block-diagonal, lane-padded weights).
    wi2o = w_ref[m["r_i2o"]:m["r_i2o"] + TN, :]               # (TN, LW), cols >= TK are zero
    bi2o = w_ref[m["r_i2ob"]:m["r_i2ob"] + 1, :]              # (1, LW),  cols >= TK are zero
    h_in = h if TN == LW else h[:, :TN]
    from_in = jnp.dot(h_in, wi2o, preferred_element_type=jnp.float32) + bi2o
    relu_fi = jnp.maximum(from_in, 0.0)                       # (B, LW); cols >= TK are zero

    if a == 1.0:
        # output_t = relu(i2o(h_t)): no recurrence left -> one dense store.
        out_ref[...] = relu_fi if OUT_W == LW else relu_fi[:, :OUT_W]
    else:
        # Only the tiny l2o recurrence stays sequential (statically unrolled);
        # relu(from_in) is already hoisted/vectorized above.
        wl2o = w_ref[m["r_l2o"]:m["r_l2o"] + K, :K]           # (K, K)
        bl2o = w_ref[m["r_l2ob"]:m["r_l2ob"] + 1, :K]         # (1, K)
        last = jnp.zeros((B, K), jnp.float32)
        pieces = []
        for t in range(input_t):
            fi = relu_fi[:, t * K:(t + 1) * K]                # static lane slice
            fl = jnp.dot(last, wl2o, preferred_element_type=jnp.float32) + bl2o
            last = a * fi + (1.0 - a) * fl
            pieces.append(last)
        if OUT_W > TK:
            pieces.append(jnp.zeros((B, OUT_W - TK), jnp.float32))
        out_ref[...] = jnp.concatenate(pieces, axis=-1)       # one store


# --------------------------------------------------------------------------- #
# Jitted wrapper (param prep hoisted; single dispatch per call)
# --------------------------------------------------------------------------- #
def make_forward(input_t, a, meta):
    a = float(a)
    kernel = functools.partial(_forward_kernel, a, input_t, meta)
    vmem = pl.BlockSpec(memory_space=pltpu.MemorySpace.VMEM)
    K, TK, OUT_W, I = meta["K"], meta["TK"], meta["OUT_W"], meta["I"]

    @jax.jit
    def forward(x_i, w_pack, v_i):
        B = x_i.shape[0]
        # Lane-dense (B, input_t*I) slab for the in-kernel BatchNorm statistics.
        x_pack = x_i[:, :input_t].reshape(B, input_t * I)
        out = pl.pallas_call(
            kernel,
            out_shape=jax.ShapeDtypeStruct((B, OUT_W), jnp.float32),
            in_specs=[vmem, vmem],
            out_specs=vmem,
        )(x_pack, w_pack)
        # (B, input_t*K) -> (input_t, B, K): outputs[t] == output_list[t].
        outputs = jnp.transpose(out[:, :TK].reshape(B, input_t, K), (1, 0, 2))
        # relu(v_i) is recurrence-independent and tiny; fused into the same jit.
        return outputs, jnp.maximum(v_i, 0.0)

    return forward


def dynamic_model_nznt_forward(x_i, z_u, z_v, input_t, params, a=1.0):
    """Convenience one-shot API (packs params then calls the jitted forward)."""
    del z_u, z_v  # unused by the PyTorch forward as well
    w_pack, meta = pack_weights(params, input_t)
    forward = make_forward(input_t, a, meta)
    return forward(x_i, w_pack, params["v_i"])


# --------------------------------------------------------------------------- #
# Plain-JAX reference mirroring the PyTorch forward (sanity check)
# --------------------------------------------------------------------------- #
def _reference_forward(x_i, input_t, params, a=1.0):
    B = x_i.shape[0]
    K = params["i2o_w"].shape[0]
    last = jnp.zeros((B, K), jnp.float32)
    outs = []
    for t in range(input_t):
        x = x_i[:, t]
        mean = jnp.mean(x, axis=0, keepdims=True)
        var = jnp.mean((x - mean) ** 2, axis=0, keepdims=True)
        xn = (x - mean) / jnp.sqrt(var + 1e-5)
        xn = xn * params["bn_gamma"][t] + params["bn_beta"][t]
        h = jnp.maximum(xn @ params["fc_w"][t].T + params["fc_b"][t], 0.0)
        from_in = h @ params["i2o_w"].T + params["i2o_b"]
        from_last = last @ params["l2o_w"].T + params["l2o_b"]
        last = a * jnp.maximum(from_in, 0.0) + (1 - a) * from_last
        outs.append(last)
    return jnp.stack(outs), jnp.maximum(params["v_i"], 0.0)


def init_params(key, T, I, K, nodes):
    """Deterministic synthetic init (kaiming-uniform-style bounds). Uses
    non-trivial BN gamma/beta so the affine-folding path is exercised."""
    ks = jax.random.split(key, 10)

    def kaiming(k, shape):
        bound = math.sqrt(6.0 / shape[-1])
        return jax.random.uniform(k, shape, jnp.float32, -bound, bound)

    def bias(k, shape, fan_in):
        bound = 1.0 / math.sqrt(fan_in)
        return jax.random.uniform(k, shape, jnp.float32, -bound, bound)

    return {
        "v_i": kaiming(ks[0], (K, I)),
        "fc_w": kaiming(ks[1], (T, nodes, I)),
        "fc_b": bias(ks[2], (T, nodes), I),
        "i2o_w": kaiming(ks[3], (K, nodes)),
        "i2o_b": bias(ks[4], (K,), nodes),
        "l2o_w": kaiming(ks[5], (K, K)),
        "l2o_b": bias(ks[6], (K,), K),
        "bn_gamma": jax.random.uniform(ks[7], (T, I), jnp.float32, 0.5, 1.5),
        "bn_beta": jax.random.uniform(ks[8], (T, I), jnp.float32, -0.5, 0.5),
    }


if __name__ == "__main__":
    B, T, I, K, nodes = 8, 4, 16, 8, 32
    input_t = T

    key = jax.random.PRNGKey(0)
    kx, kp = jax.random.split(key)
    x_i = jax.random.normal(kx, (B, T, I), jnp.float32)
    z_u = jnp.zeros((B,), jnp.float32)   # unused (as in the PyTorch forward)
    z_v = jnp.zeros((B,), jnp.float32)   # unused
    params = init_params(kp, T, I, K, nodes)

    # Param-only prep done ONCE; per-call path is a single jitted dispatch.
    w_pack, meta = pack_weights(params, input_t)
    forward_a1 = make_forward(input_t, 1.0, meta)    # module default a == 1
    forward_a05 = make_forward(input_t, 0.5, meta)   # exercises the recurrence

    outputs, vi_relu = forward_a1(x_i, w_pack, params["v_i"])
    jax.block_until_ready(outputs)
    jax.block_until_ready(vi_relu)

    ref_outs, ref_vi = _reference_forward(x_i, input_t, params, a=1.0)
    assert jnp.allclose(outputs, ref_outs, rtol=1e-4, atol=1e-4), "a=1.0 output mismatch"
    assert jnp.allclose(vi_relu, ref_vi, rtol=1e-5, atol=1e-5), "v_i mismatch"

    outputs2, _ = forward_a05(x_i, w_pack, params["v_i"])
    jax.block_until_ready(outputs2)
    ref_outs2, _ = _reference_forward(x_i, input_t, params, a=0.5)
    assert jnp.allclose(outputs2, ref_outs2, rtol=1e-4, atol=1e-4), "a=0.5 output mismatch"

    # Convenience API parity check.
    outputs3, _ = dynamic_model_nznt_forward(x_i, z_u, z_v, input_t, params, a=1.0)
    jax.block_until_ready(outputs3)
    assert jnp.allclose(outputs3, ref_outs, rtol=1e-4, atol=1e-4), "wrapper mismatch"

    print("KERNEL_OK")
</pallas_src>

<mosaic_0001>
module attributes {stable_mosaic.version = 11 : i64} {
  func.func @_forward_kernel(%arg0: memref<8x64xf32, #tpu.memory_space<vmem>>, %arg1: memref<224x128xf32, #tpu.memory_space<vmem>>, %arg2: memref<8x128xf32, #tpu.memory_space<vmem>>) attributes {dimension_semantics = [], scalar_prefetch = 0 : i64, scratch_operands = 0 : i64, tpu.core_type = #tpu.core_type<tc>} {
    %c0 = arith.constant 0 : index
    %c0_0 = arith.constant 0 : index
    %0 = vector.load %arg0[%c0, %c0_0] : memref<8x64xf32, #tpu.memory_space<vmem>>, vector<8x64xf32>
    %cst = arith.constant dense<0.000000e+00> : vector<64xf32>
    %1 = vector.multi_reduction <add>, %0, %cst [0] : vector<8x64xf32> to vector<64xf32>
    %2 = vector.shape_cast %1 : vector<64xf32> to vector<1x64xf32>
    %cst_1 = arith.constant 8.000000e+00 : f32
    %3 = vector.broadcast %cst_1 : f32 to vector<1x64xf32>
    %4 = arith.divf %2, %3 : vector<1x64xf32>
    %5 = vector.broadcast %4 : vector<1x64xf32> to vector<8x64xf32>
    %6 = arith.subf %0, %5 : vector<8x64xf32>
    %7 = arith.mulf %6, %6 : vector<8x64xf32>
    %cst_2 = arith.constant dense<0.000000e+00> : vector<64xf32>
    %8 = vector.multi_reduction <add>, %7, %cst_2 [0] : vector<8x64xf32> to vector<64xf32>
    %9 = vector.shape_cast %8 : vector<64xf32> to vector<1x64xf32>
    %cst_3 = arith.constant 8.000000e+00 : f32
    %10 = vector.broadcast %cst_3 : f32 to vector<1x64xf32>
    %11 = arith.divf %9, %10 : vector<1x64xf32>
    %12 = vector.broadcast %4 : vector<1x64xf32> to vector<8x64xf32>
    %13 = arith.subf %0, %12 : vector<8x64xf32>
    %cst_4 = arith.constant 9.99999974E-6 : f32
    %14 = vector.broadcast %cst_4 : f32 to vector<1x64xf32>
    %15 = arith.addf %11, %14 : vector<1x64xf32>
    %16 = math.rsqrt %15 : vector<1x64xf32>
    %17 = vector.broadcast %16 : vector<1x64xf32> to vector<8x64xf32>
    %18 = arith.mulf %13, %17 : vector<8x64xf32>
    %c0_5 = arith.constant 0 : index
    %c0_6 = arith.constant 0 : index
    %19 = vector.load %arg1[%c0_5, %c0_6] : memref<224x128xf32, #tpu.memory_space<vmem>>, vector<64x128xf32>
    %c200 = arith.constant 200 : index
    %c0_7 = arith.constant 0 : index
    %20 = vector.load %arg1[%c200, %c0_7] : memref<224x128xf32, #tpu.memory_space<vmem>>, vector<1x128xf32>
    %cst_8 = arith.constant dense<0.000000e+00> : vector<8x128xf32>
    %21 = tpu.matmul %18, %19, %cst_8 {dimension_numbers = #tpu.dot_dimension_numbers<[1], [0], [0], [1], [0, 0, 1, 1], [], []>} : vector<8x64xf32>, vector<64x128xf32>, vector<8x128xf32> -> vector<8x128xf32>
    %22 = vector.broadcast %20 : vector<1x128xf32> to vector<8x128xf32>
    %23 = arith.addf %21, %22 : vector<8x128xf32>
    %cst_9 = arith.constant 0.000000e+00 : f32
    %24 = vector.broadcast %cst_9 : f32 to vector<8x128xf32>
    %25 = arith.maximumf %23, %24 : vector<8x128xf32>
    %c64 = arith.constant 64 : index
    %c0_10 = arith.constant 0 : index
    %26 = vector.load %arg1[%c64, %c0_10] : memref<224x128xf32, #tpu.memory_space<vmem>>, vector<128x128xf32>
    %c208 = arith.constant 208 : index
    %c0_11 = arith.constant 0 : index
    %27 = vector.load %arg1[%c208, %c0_11] : memref<224x128xf32, #tpu.memory_space<vmem>>, vector<1x128xf32>
    %cst_12 = arith.constant dense<0.000000e+00> : vector<8x128xf32>
    %28 = tpu.matmul %25, %26, %cst_12 {dimension_numbers = #tpu.dot_dimension_numbers<[1], [0], [0], [1], [0, 0, 1, 1], [], []>} : vector<8x128xf32>, vector<128x128xf32>, vector<8x128xf32> -> vector<8x128xf32>
    %29 = vector.broadcast %27 : vector<1x128xf32> to vector<8x128xf32>
    %30 = arith.addf %28, %29 : vector<8x128xf32>
    %cst_13 = arith.constant 0.000000e+00 : f32
    %31 = vector.broadcast %cst_13 : f32 to vector<8x128xf32>
    %32 = arith.maximumf %30, %31 : vector<8x128xf32>
    %c0_14 = arith.constant 0 : index
    %c0_15 = arith.constant 0 : index
    %33 = vector.load %arg2[%c0_14, %c0_15] : memref<8x128xf32, #tpu.memory_space<vmem>>, vector<8x128xf32>
    tpu.vector_store %arg2[%c0_14, %c0_15], %32 {strides = array<i32>} : memref<8x128xf32, #tpu.memory_space<vmem>>, vector<8x128xf32>,
    return
  }
}

</mosaic_0001>

<bundles_post_ra>
// kernel: forward.1
= control target key start
LH: loop header
LB: loop body
LE: loop exit
PB: predicated region body
PF: predicated region fallthrough
CT: control target
= control target key end

     0   :  { %7 = vsyncpa [#allocation3], 0  ;;  %s385_s9 = smov [#allocation2]   ;;  %s439_s0 = inlined_call_operand.vmem [shape: f32[8,64], index: 0, kind: input, shape index: {}]   ;;  %s440_s1 = inlined_call_operand.hbm [shape: f32[224,128], index: 1, kind: input, shape index: {}]   ;;  %s441_s2 = inlined_call_operand.vmem [shape: f32[8,128], index: 2, kind: output, shape index: {}]  }
   0x1   :  { %s15_s10 = sshll.u32 %s385_s9, 4  ;;  %s361_s13 = scalar_lea.hbm %s440_s1, 3584  ;;  %s16_s10 = int_to_ptr.vmem [resolvable:$true] %s15_s10 }
   0x2   :  { %p362_p0 = scmp.ne.s32.totalorder %s440_s1, %s361_s13  ;;  %p365_p1 = scmp.lt.u32.totalorder %s361_s13, %s440_s1 }
   0x4   :  { %p367_p2 = pnand %p365_p1, %p362_p0 }
   0x6   :  { %370 = shalt.err (!%p367_p2)
}
   0x7   :  { %s371_s18 = scalar_lea.vmem %s16_s10, 3584  ;;  %p376_p4 = scmp.lt.s32.totalorder %s16_s10, %s16_s10 }
   0x8   :  { %p372_p3 = scmp.ne.s32.totalorder %s16_s10, %s371_s18  ;;  %p377_p5 = scmp.lt.s32.totalorder %s371_s18, %s371_s18 }
   0xa   :  { %p378_p6 = por %p377_p5, %p376_p4 }
   0xc   :  { %p379_p7 = pnand %p378_p6, %p372_p3 }
   0xe   :  { %382 = shalt.err (!%p379_p7)
}
   0xf   :  { %s386_s19 = smov 128   ;;  %s387_s20 = smov 8  }
  0x10   :  { %21 = dma.hbm_to_vmem [thread:$0]  %s440_s1, 3584, %s16_s10, [#allocation3], %s386_s19, %s386_s19, %s387_s20  }
  0x11   :  { %383 = dma.done.wait [#allocation3], 3584  }
  0x12   :  { %384 = vsyncadd [#allocation3], 4294963712  ;;  %v388_v0 = vmov 0.0|0.0   ;;  %vm389_vm0 = vmmov 0   ;;  %v390_v1 = vmov 0.0   ;;  %v49_v2 = vld [vmem:[#allocation2] sm:$0xff] }
  0x13   :  { %317 = vmatprep.subr.bf16.mxu0 %v388_v0  ;;  %279 = vmatprep.mubr.msk.f32.mxu0 %vm389_vm0, %v390_v1  ;;  %v50_v3 = vld [vmem:[#allocation2 + $0x8] sm:$0xff]  ;;  %v51_v4 = vld [vmem:[#allocation2 + $0x10] sm:$0xff]  ;;  %vm26_vm1 = vcmask 523264   ;;  %v52_v6 = vld [vmem:[#allocation2 + $0x18] sm:$0xff] }
  0x14   :  { %329 = vmatprep.subr.bf16.mxu1 %v388_v0  ;;  %314 = vmatprep.mubr.msk.f32.mxu1 %vm389_vm0, %v390_v1  ;;  %v318_v5 = vpack.c.bf16 %v50_v3, %v49_v2  ;;  %v25_v7 = vld [vmem:[%s439_s0] sm:$0xff]  ;;  %v321_v8 = vpack.c.bf16 %v52_v6, %v51_v4  ;;  %v137_v11 = vld [vmem:[#allocation2 + $0x48] sm:$0xff]  ;;  %v138_v12 = vld [vmem:[#allocation2 + $0x50] sm:$0xff] }
  0x15   :  { %v27_v9 = vsel %vm26_vm1, %v25_v7, 0.0  ;;  %v136_v10 = vld [vmem:[#allocation2 + $0x40] sm:$0xff]  ;;  %v54_v14 = vld [vmem:[#allocation2 + $0x28] sm:$0xff]  ;;  %v139_v17 = vld [vmem:[#allocation2 + $0x58] sm:$0xff] }
  0x16   :  { %319 = vmatpush3.bf16.msra.mxu0 %v318_v5  ;;  %v53_v13 = vld [vmem:[#allocation2 + $0x20] sm:$0xff]  ;;  %v28_v15 = vrot.slane %v27_v9, 4  ;;  %v330_v16 = vpack.c.bf16 %v137_v11, %v136_v10  ;;  %v333_v19 = vpack.c.bf16 %v139_v17, %v138_v12  ;;  %v141_v22 = vld [vmem:[#allocation2 + $0x68] sm:$0xff]  ;;  %v55_v23 = vld [vmem:[#allocation2 + $0x30] sm:$0xff] }
  0x17   :  { %320 = vmatprep.subr.bf16.mxu0 %v388_v0  ;;  %v324_v20 = vpack.c.bf16 %v54_v14, %v53_v13  ;;  %v140_v21 = vld [vmem:[#allocation2 + $0x60] sm:$0xff]  ;;  %v56_v24 = vld [vmem:[#allocation2 + $0x38] sm:$0xff]  ;;  %v142_v29 = vld [vmem:[#allocation2 + $0x70] sm:$0xff] }
  0x18   :  { %v29_v18 = vadd.f32 %v28_v15, %v27_v9  ;;  %331 = vmatpush3.bf16.msra.mxu1 %v330_v16  ;;  %v336_v27 = vpack.c.bf16 %v141_v22, %v140_v21  ;;  %v327_v28 = vpack.c.bf16 %v56_v24, %v55_v23  ;;  %v143_v30 = vld [vmem:[#allocation2 + $0x78] sm:$0xff]  ;;  %v144_v34 = vld [vmem:[#allocation2 + $0x80] sm:$0xff]  ;;  %v145_v35 = vld [vmem:[#allocation2 + $0x88] sm:$0xff] }
  0x19   :  { %332 = vmatprep.subr.bf16.mxu1 %v388_v0  ;;  %v339_v33 = vpack.c.bf16 %v143_v30, %v142_v29  ;;  %v342_v38 = vpack.c.bf16 %v145_v35, %v144_v34  ;;  %v146_v39 = vld [vmem:[#allocation2 + $0x90] sm:$0xff]  ;;  %v147_v40 = vld [vmem:[#allocation2 + $0x98] sm:$0xff]  ;;  %v148_v45 = vld [vmem:[#allocation2 + $0xa0] sm:$0xff] }
  0x1a   :  { %322 = vmatpush3.bf16.msra.mxu0 %v321_v8  ;;  %v30_v25 = vrot.slane %v29_v18, 2  ;;  %v345_v43 = vpack.c.bf16 %v147_v40, %v146_v39  ;;  %v149_v46 = vld [vmem:[#allocation2 + $0xa8] sm:$0xff]  ;;  %v150_v57 = vld [vmem:[#allocation2 + $0xb0] sm:$0xff]  ;;  %v151_v58 = vld [vmem:[#allocation2 + $0xb8] sm:$0xff] }
  0x1b   :  { %323 = vmatprep.subr.bf16.mxu0 %v388_v0  ;;  %v348_v48 = vpack.c.bf16 %v149_v46, %v148_v45  ;;  %v351_v59 = vpack.c.bf16 %v151_v58, %v150_v57  ;;  %v234_v60 = vld [vmem:[#allocation2 + $0xc8] ss:$0 sm:$0xff]  ;;  %v236_v2 = vld [vmem:[#allocation2 + $0xd0] ss:$0 sm:$0xff] }
  0x1c   :  { %v31_v26 = vadd.f32 %v30_v25, %v29_v18  ;;  %334 = vmatpush3.bf16.msra.mxu1 %v333_v19 }
  0x1d   :  { %335 = vmatprep.subr.bf16.mxu1 %v388_v0 }
  0x1e   :  { %325 = vmatpush3.bf16.msra.mxu0 %v324_v20  ;;  %v32_v31 = vrot.slane %v31_v26, 1 }
  0x1f   :  { %326 = vmatprep.subr.bf16.mxu0 %v388_v0 }
  0x20   :  { %v33_v32 = vadd.f32 %v32_v31, %v31_v26  ;;  %337 = vmatpush3.bf16.msra.mxu1 %v336_v27 }
  0x21   :  { %338 = vmatprep.subr.bf16.mxu1 %v388_v0 }
  0x22   :  { %328 = vmatpush3.bf16.msra.mxu0 %v327_v28  ;;  %v35_v36 = vmul.f32 0.125, %v33_v32 }
  0x24   :  { %v36_v37 = vsub.f32 %v25_v7, %v35_v36  ;;  %340 = vmatpush3.bf16.msra.mxu1 %v339_v33 }
  0x25   :  { %341 = vmatprep.subr.bf16.mxu1 %v388_v0 }
  0x26   :  { %v37_v41 = vmul.f32 %v36_v37, %v36_v37 }
  0x28   :  { %v38_v42 = vsel %vm26_vm1, %v37_v41, 0.0  ;;  %343 = vmatpush3.bf16.msra.mxu1 %v342_v38 }
  0x29   :  { %v39_v44 = vrot.slane %v38_v42, 4  ;;  %344 = vmatprep.subr.bf16.mxu1 %v388_v0 }
  0x2b   :  { %v40_v47 = vadd.f32 %v39_v44, %v38_v42 }
  0x2c   :  { %346 = vmatpush3.bf16.msra.mxu1 %v345_v43 }
  0x2d   :  { %v41_v49 = vrot.slane %v40_v47, 2  ;;  %347 = vmatprep.subr.bf16.mxu1 %v388_v0 }
  0x2f   :  { %v42_v50 = vadd.f32 %v41_v49, %v40_v47 }
  0x30   :  { %349 = vmatpush3.bf16.msra.mxu1 %v348_v48 }
  0x31   :  { %v43_v51 = vrot.slane %v42_v50, 1  ;;  %350 = vmatprep.subr.bf16.mxu1 %v388_v0 }
  0x33   :  { %v44_v52 = vadd.f32 %v43_v51, %v42_v50 }
  0x34   :  { %352 = vmatpush3.bf16.msra.mxu1 %v351_v59 }
  0x35   :  { %v45_v53 = vmul.f32 0.125, %v44_v52 }
  0x37   :  { %v46_v54 = vadd.f32 1e-05, %v45_v53 }
  0x39   :  { %359 = vrsqrt.f32 %v46_v54 }
  0x43   :  { %v360_v55 = vpop.eup %359 }
  0x44   :  { %v48_v56 = vmul.f32 %v360_v55, %v36_v37 }
  0x46   :  { %280 = vmatmul.mubr.msk.f32.vlgmr.msra.gmra.mrb[0].mxu0 %vm26_vm1, %v48_v56 }
 0x119   :  { %v131_v61 = vpop.f32.mrb[0].mxu0 }
 0x11a   :  { %v132_v62 = vadd.f32 %v234_v60, %v131_v61  ;;  %v281_v63 = vpop.f32.mrb[1].mxu0 }
 0x11c   :  { %v135_v1 = vmax.f32 %v132_v62, 0.0 }
 0x11e   :  { %315 = vmatmul.mubr.f32.vlgmr.msra.gmra.mrb[0].mxu1 %v135_v1 }
 0x1f1   :  { %v223_v0 = vpop.f32.mrb[0].mxu1 }
 0x1f2   :  { %v224_v3 = vadd.f32 %v236_v2, %v223_v0  ;;  %v316_v4 = vpop.f32.mrb[1].mxu1 }
 0x1f4   :  { %v227_v5 = vmax.f32 %v224_v3, 0.0 }
 0x1f6   :  { %228 = vst [vmem:[%s441_s2] sm:$0xff] %v227_v5 }
 0x1f7   :  { %233 = vsyncpa [#allocation3], 1 }

</bundles_post_ra>
